<compile_context>
chip_gen: v6e
topology: v6e:2x2x1
jax: 0.10.0
libtpu: 0.0.40
codegen_flags: <defaults>
</compile_context>

<pallas_src>
import functools

import jax
import jax.numpy as jnp
from jax.experimental import pallas as pl
from jax.experimental.pallas import tpu as pltpu

PATCH_SIZE = 128
NUM_PATCH = 8
SEQ_LEN = PATCH_SIZE * NUM_PATCH  # 1024
NUM_CMG = 4


# ----------------------------- Pallas kernel -------------------------------

def _gelu_f32(y):
    # tanh-approx GELU in f32 (EUP tanh; nearly free under the MXU).
    c = jnp.float32(0.7978845608028654)  # sqrt(2/pi)
    return 0.5 * y * (1.0 + jnp.tanh(c * (y + 0.044715 * y * y * y)))


def _fused_dcf_kernel(xi_ref, xv_ref,
                      wi1_ref, wv1_ref, wi2_ref, wv2_ref,
                      bi1_ref, bv1_ref, bi2_ref, bv2_ref,
                      c1_ref, v1_ref, c2_ref, v2_ref):
    """One row tile: both branches, both encoder layers, all in VMEM.

    xi/xv:   (tm, 128) f32 activation tiles (cast to bf16 in-kernel)
    w*:      (128, 128) bf16 weights        b*: (1, 128) f32 biases
    c1/v1/c2/v2: (tm, 128) bf16 outputs (layer-1 and layer-2 of each branch)
    """

    def branch(x_ref, w1_ref, b1_ref, w2_ref, b2_ref, o1_ref, o2_ref):
        # In-kernel f32 -> bf16 cast: the f32 input is read from HBM exactly
        # once via the pipelined DMA (no wrapper-side astype pass).
        x = x_ref[...].astype(jnp.bfloat16)

        # Layer 1: bf16 MXU matmul, f32 accumulate, f32 epilogue.
        y1 = jnp.dot(x, w1_ref[...],
                     preferred_element_type=jnp.float32) + b1_ref[...]
        g1 = _gelu_f32(y1)

        # Layer 2 chained on the in-VMEM layer-1 result (no HBM round trip).
        y2 = jnp.dot(g1.astype(jnp.bfloat16), w2_ref[...],
                     preferred_element_type=jnp.float32) + b2_ref[...]
        g2 = _gelu_f32(y2)

        # Two lane-dense 128-wide stores, bf16 writeback.
        o1_ref[...] = g1.astype(o1_ref.dtype)
        o2_ref[...] = g2.astype(o2_ref.dtype)

    branch(xi_ref, wi1_ref, bi1_ref, wi2_ref, bi2_ref, c1_ref, c2_ref)
    branch(xv_ref, wv1_ref, bv1_ref, wv2_ref, bv2_ref, v1_ref, v2_ref)


# ------------------------------ tiling helper --------------------------------

def _row_tile(m):
    """Row tile that divides M (no padding), is a multiple of 16 (bf16-native
    (16,128) tiles), caps at 1024, and leaves >= 2 grid steps when M is large
    enough so both v7x TensorCores get work."""
    cap = 1024
    if 32 <= m <= 2 * cap:
        cap = max(16, m // 2)   # ensure at least 2 parallel grid steps
    cap = min(cap, m)
    t = (cap // 16) * 16
    while t >= 16:
        if m % t == 0:
            return t
        t -= 16
    # Fallback (e.g. M not a multiple of 16): one full-extent block, which is
    # always a legal block shape and avoids any padding.
    return m


# ------------------------------ DCF_T model ---------------------------------

def init_encoder_params(key):
    kw, kb = jax.random.split(key)
    w = jax.random.normal(kw, (PATCH_SIZE, PATCH_SIZE), jnp.float32) * 0.02
    b = jax.random.normal(kb, (PATCH_SIZE,), jnp.float32) * 0.01
    return {"w": w, "b": b}


def init_dcf_t_params(key):
    k1, k2, k3, k4 = jax.random.split(key, 4)
    return {
        "EncoderI1": init_encoder_params(k1),
        "EncoderV1": init_encoder_params(k2),
        "EncoderI2": init_encoder_params(k3),
        "EncoderV2": init_encoder_params(k4),
    }


@functools.partial(jax.jit, static_argnames=("out_dtype",))
def dcf_t_forward(params, current, voltage, out_dtype=jnp.bfloat16):
    """Fused DCF_T forward: returns (current1, voltage1, current2, voltage2).

    Outputs are stored in bf16 by default (layer-1 is consumed as bf16 by
    layer-2 anyway); pass out_dtype=jnp.float32 for full-precision writeback.
    """
    B, C, L = current.shape
    assert L == SEQ_LEN and voltage.shape == current.shape
    M = B * C * NUM_PATCH

    # Free, contiguous metadata reshapes — no stack / astype / pad copies.
    xi = current.reshape(M, PATCH_SIZE)
    xv = voltage.reshape(M, PATCH_SIZE)

    tm = _row_tile(M)
    n_rows = M // tm

    # Weight casts are tiny (4 x 32 KiB) and done once per call.
    wi1 = params["EncoderI1"]["w"].astype(jnp.bfloat16)
    wv1 = params["EncoderV1"]["w"].astype(jnp.bfloat16)
    wi2 = params["EncoderI2"]["w"].astype(jnp.bfloat16)
    wv2 = params["EncoderV2"]["w"].astype(jnp.bfloat16)
    bi1 = params["EncoderI1"]["b"].reshape(1, PATCH_SIZE)
    bv1 = params["EncoderV1"]["b"].reshape(1, PATCH_SIZE)
    bi2 = params["EncoderI2"]["b"].reshape(1, PATCH_SIZE)
    bv2 = params["EncoderV2"]["b"].reshape(1, PATCH_SIZE)

    x_spec = pl.BlockSpec((tm, PATCH_SIZE), lambda i: (i, 0))
    w_spec = pl.BlockSpec((PATCH_SIZE, PATCH_SIZE), lambda i: (0, 0))
    b_spec = pl.BlockSpec((1, PATCH_SIZE), lambda i: (0, 0))
    o_spec = pl.BlockSpec((tm, PATCH_SIZE), lambda i: (i, 0))

    out_shape = tuple(
        jax.ShapeDtypeStruct((M, PATCH_SIZE), out_dtype) for _ in range(4))

    c1, v1, c2, v2 = pl.pallas_call(
        _fused_dcf_kernel,
        out_shape=out_shape,
        grid_spec=pltpu.PrefetchScalarGridSpec(
            num_scalar_prefetch=0,
            grid=(n_rows,),
            in_specs=[x_spec, x_spec,
                      w_spec, w_spec, w_spec, w_spec,
                      b_spec, b_spec, b_spec, b_spec],
            out_specs=[o_spec, o_spec, o_spec, o_spec],
        ),
        compiler_params=pltpu.CompilerParams(
            dimension_semantics=("parallel",)),
    )(xi, xv, wi1, wv1, wi2, wv2, bi1, bv1, bi2, bv2)

    # (M, 128) -> (B, C, L) is a free metadata reshape; no epilogue copies.
    rs = lambda a: a.reshape(B, C, L)
    return rs(c1), rs(v1), rs(c2), rs(v2)


# ------------------------------ reference -----------------------------------

def _encoder_ref(x, w, b):
    B, C, L = x.shape
    xf = x.reshape(B * C * NUM_PATCH, PATCH_SIZE).astype(jnp.bfloat16)
    y = jnp.dot(xf, w.astype(jnp.bfloat16),
                preferred_element_type=jnp.float32) + b.reshape(1, PATCH_SIZE)
    return _gelu_f32(y).reshape(B, C, L)


def dcf_t_reference(params, current, voltage):
    c1 = _encoder_ref(current, params["EncoderI1"]["w"], params["EncoderI1"]["b"])
    v1 = _encoder_ref(voltage, params["EncoderV1"]["w"], params["EncoderV1"]["b"])
    c2 = _encoder_ref(c1, params["EncoderI2"]["w"], params["EncoderI2"]["b"])
    v2 = _encoder_ref(v1, params["EncoderV2"]["w"], params["EncoderV2"]["b"])
    return c1, v1, c2, v2


if __name__ == "__main__":
    key = jax.random.PRNGKey(0)
    kp, kc, kv = jax.random.split(key, 3)

    params = init_dcf_t_params(kp)

    batch = 2
    current = jax.random.normal(kc, (batch, NUM_CMG, SEQ_LEN), jnp.float32)
    voltage = jax.random.normal(kv, (batch, NUM_CMG, SEQ_LEN), jnp.float32)

    c1, v1, c2, v2 = dcf_t_forward(params, current, voltage)
    jax.block_until_ready((c1, v1, c2, v2))

    assert c1.shape == current.shape and v1.shape == voltage.shape
    assert c2.shape == current.shape and v2.shape == voltage.shape

    # Numerical sanity check against a same-matmul-precision pure-JAX reference
    # (kernel outputs are bf16; tolerance covers the storage rounding).
    rc1, rv1, rc2, rv2 = dcf_t_reference(params, current, voltage)
    for got, ref in ((c1, rc1), (v1, rv1), (c2, rc2), (v2, rv2)):
        diff = jnp.max(jnp.abs(got.astype(jnp.float32) - ref))
        assert jnp.allclose(got.astype(jnp.float32), ref,
                            atol=2e-2, rtol=2e-2), float(diff)

    print("KERNEL_OK")
</pallas_src>

<mosaic_0001>
module attributes {stable_mosaic.version = 11 : i64} {
  func.func @_fused_dcf_kernel(%arg0: i32, %arg1: memref<32x128xf32, #tpu.memory_space<vmem>>, %arg2: memref<32x128xf32, #tpu.memory_space<vmem>>, %arg3: memref<128x128xbf16, #tpu.memory_space<vmem>>, %arg4: memref<128x128xbf16, #tpu.memory_space<vmem>>, %arg5: memref<128x128xbf16, #tpu.memory_space<vmem>>, %arg6: memref<128x128xbf16, #tpu.memory_space<vmem>>, %arg7: memref<1x128xf32, #tpu.memory_space<vmem>>, %arg8: memref<1x128xf32, #tpu.memory_space<vmem>>, %arg9: memref<1x128xf32, #tpu.memory_space<vmem>>, %arg10: memref<1x128xf32, #tpu.memory_space<vmem>>, %arg11: memref<32x128xbf16, #tpu.memory_space<vmem>>, %arg12: memref<32x128xbf16, #tpu.memory_space<vmem>>, %arg13: memref<32x128xbf16, #tpu.memory_space<vmem>>, %arg14: memref<32x128xbf16, #tpu.memory_space<vmem>>) attributes {dimension_semantics = [#tpu.dimension_semantics<parallel>], iteration_bounds = array<i64: 2>, scalar_prefetch = 0 : i64, scratch_operands = 0 : i64, tpu.core_type = #tpu.core_type<tc>, window_params = [{transform_indices = @transform_0, window_bounds = array<i64: 32, 128>}, {transform_indices = @transform_1, window_bounds = array<i64: 32, 128>}, {pipeline_mode = #tpu.pipeline_mode<synchronous>, transform_indices = @transform_2, window_bounds = array<i64: 128, 128>}, {pipeline_mode = #tpu.pipeline_mode<synchronous>, transform_indices = @transform_3, window_bounds = array<i64: 128, 128>}, {pipeline_mode = #tpu.pipeline_mode<synchronous>, transform_indices = @transform_4, window_bounds = array<i64: 128, 128>}, {pipeline_mode = #tpu.pipeline_mode<synchronous>, transform_indices = @transform_5, window_bounds = array<i64: 128, 128>}, {pipeline_mode = #tpu.pipeline_mode<synchronous>, transform_indices = @transform_6, window_bounds = array<i64: 1, 128>}, {pipeline_mode = #tpu.pipeline_mode<synchronous>, transform_indices = @transform_7, window_bounds = array<i64: 1, 128>}, {pipeline_mode = #tpu.pipeline_mode<synchronous>, transform_indices = @transform_8, window_bounds = array<i64: 1, 128>}, {pipeline_mode = #tpu.pipeline_mode<synchronous>, transform_indices = @transform_9, window_bounds = array<i64: 1, 128>}, {transform_indices = @transform_10, window_bounds = array<i64: 32, 128>}, {transform_indices = @transform_11, window_bounds = array<i64: 32, 128>}, {transform_indices = @transform_12, window_bounds = array<i64: 32, 128>}, {transform_indices = @transform_13, window_bounds = array<i64: 32, 128>}]} {
    %c0 = arith.constant 0 : index
    %c0_0 = arith.constant 0 : index
    %0 = vector.load %arg1[%c0, %c0_0] : memref<32x128xf32, #tpu.memory_space<vmem>>, vector<32x128xf32>
    %1 = arith.truncf %0 : vector<32x128xf32> to vector<32x128xbf16>
    %c0_1 = arith.constant 0 : index
    %c0_2 = arith.constant 0 : index
    %2 = vector.load %arg3[%c0_1, %c0_2] : memref<128x128xbf16, #tpu.memory_space<vmem>>, vector<128x128xbf16>
    %cst = arith.constant dense<0.000000e+00> : vector<32x128xf32>
    %3 = tpu.matmul %1, %2, %cst {dimension_numbers = #tpu.dot_dimension_numbers<[1], [0], [0], [1], [0, 0, 1, 1], [], []>} : vector<32x128xbf16>, vector<128x128xbf16>, vector<32x128xf32> -> vector<32x128xf32>
    %c0_3 = arith.constant 0 : index
    %c0_4 = arith.constant 0 : index
    %4 = vector.load %arg7[%c0_3, %c0_4] : memref<1x128xf32, #tpu.memory_space<vmem>>, vector<1x128xf32>
    %5 = vector.broadcast %4 : vector<1x128xf32> to vector<32x128xf32>
    %6 = arith.addf %3, %5 : vector<32x128xf32>
    %cst_5 = arith.constant 5.000000e-01 : f32
    %7 = vector.broadcast %cst_5 : f32 to vector<32x128xf32>
    %8 = arith.mulf %7, %6 : vector<32x128xf32>
    %cst_6 = arith.constant 4.471500e-02 : f32
    %9 = vector.broadcast %cst_6 : f32 to vector<32x128xf32>
    %10 = arith.mulf %9, %6 : vector<32x128xf32>
    %11 = arith.mulf %10, %6 : vector<32x128xf32>
    %12 = arith.mulf %11, %6 : vector<32x128xf32>
    %13 = arith.addf %6, %12 : vector<32x128xf32>
    %cst_7 = arith.constant 0.797884583 : f32
    %14 = vector.broadcast %cst_7 : f32 to vector<32x128xf32>
    %15 = arith.mulf %14, %13 : vector<32x128xf32>
    %16 = math.tanh %15 : vector<32x128xf32>
    %cst_8 = arith.constant 1.000000e+00 : f32
    %17 = vector.broadcast %cst_8 : f32 to vector<32x128xf32>
    %18 = arith.addf %17, %16 : vector<32x128xf32>
    %19 = arith.mulf %8, %18 : vector<32x128xf32>
    %20 = arith.truncf %19 : vector<32x128xf32> to vector<32x128xbf16>
    %c0_9 = arith.constant 0 : index
    %c0_10 = arith.constant 0 : index
    %21 = vector.load %arg5[%c0_9, %c0_10] : memref<128x128xbf16, #tpu.memory_space<vmem>>, vector<128x128xbf16>
    %cst_11 = arith.constant dense<0.000000e+00> : vector<32x128xf32>
    %22 = tpu.matmul %20, %21, %cst_11 {dimension_numbers = #tpu.dot_dimension_numbers<[1], [0], [0], [1], [0, 0, 1, 1], [], []>} : vector<32x128xbf16>, vector<128x128xbf16>, vector<32x128xf32> -> vector<32x128xf32>
    %c0_12 = arith.constant 0 : index
    %c0_13 = arith.constant 0 : index
    %23 = vector.load %arg9[%c0_12, %c0_13] : memref<1x128xf32, #tpu.memory_space<vmem>>, vector<1x128xf32>
    %24 = vector.broadcast %23 : vector<1x128xf32> to vector<32x128xf32>
    %25 = arith.addf %22, %24 : vector<32x128xf32>
    %cst_14 = arith.constant 5.000000e-01 : f32
    %26 = vector.broadcast %cst_14 : f32 to vector<32x128xf32>
    %27 = arith.mulf %26, %25 : vector<32x128xf32>
    %cst_15 = arith.constant 4.471500e-02 : f32
    %28 = vector.broadcast %cst_15 : f32 to vector<32x128xf32>
    %29 = arith.mulf %28, %25 : vector<32x128xf32>
    %30 = arith.mulf %29, %25 : vector<32x128xf32>
    %31 = arith.mulf %30, %25 : vector<32x128xf32>
    %32 = arith.addf %25, %31 : vector<32x128xf32>
    %cst_16 = arith.constant 0.797884583 : f32
    %33 = vector.broadcast %cst_16 : f32 to vector<32x128xf32>
    %34 = arith.mulf %33, %32 : vector<32x128xf32>
    %35 = math.tanh %34 : vector<32x128xf32>
    %cst_17 = arith.constant 1.000000e+00 : f32
    %36 = vector.broadcast %cst_17 : f32 to vector<32x128xf32>
    %37 = arith.addf %36, %35 : vector<32x128xf32>
    %38 = arith.mulf %27, %37 : vector<32x128xf32>
    %39 = arith.truncf %19 : vector<32x128xf32> to vector<32x128xbf16>
    %c0_18 = arith.constant 0 : index
    %c0_19 = arith.constant 0 : index
    %40 = vector.load %arg11[%c0_18, %c0_19] : memref<32x128xbf16, #tpu.memory_space<vmem>>, vector<32x128xbf16>
    tpu.vector_store %arg11[%c0_18, %c0_19], %39 {strides = array<i32>} : memref<32x128xbf16, #tpu.memory_space<vmem>>, vector<32x128xbf16>,
    %41 = arith.truncf %38 : vector<32x128xf32> to vector<32x128xbf16>
    %c0_20 = arith.constant 0 : index
    %c0_21 = arith.constant 0 : index
    %42 = vector.load %arg13[%c0_20, %c0_21] : memref<32x128xbf16, #tpu.memory_space<vmem>>, vector<32x128xbf16>
    tpu.vector_store %arg13[%c0_20, %c0_21], %41 {strides = array<i32>} : memref<32x128xbf16, #tpu.memory_space<vmem>>, vector<32x128xbf16>,
    %c0_22 = arith.constant 0 : index
    %c0_23 = arith.constant 0 : index
    %43 = vector.load %arg2[%c0_22, %c0_23] : memref<32x128xf32, #tpu.memory_space<vmem>>, vector<32x128xf32>
    %44 = arith.truncf %43 : vector<32x128xf32> to vector<32x128xbf16>
    %c0_24 = arith.constant 0 : index
    %c0_25 = arith.constant 0 : index
    %45 = vector.load %arg4[%c0_24, %c0_25] : memref<128x128xbf16, #tpu.memory_space<vmem>>, vector<128x128xbf16>
    %cst_26 = arith.constant dense<0.000000e+00> : vector<32x128xf32>
    %46 = tpu.matmul %44, %45, %cst_26 {dimension_numbers = #tpu.dot_dimension_numbers<[1], [0], [0], [1], [0, 0, 1, 1], [], []>} : vector<32x128xbf16>, vector<128x128xbf16>, vector<32x128xf32> -> vector<32x128xf32>
    %c0_27 = arith.constant 0 : index
    %c0_28 = arith.constant 0 : index
    %47 = vector.load %arg8[%c0_27, %c0_28] : memref<1x128xf32, #tpu.memory_space<vmem>>, vector<1x128xf32>
    %48 = vector.broadcast %47 : vector<1x128xf32> to vector<32x128xf32>
    %49 = arith.addf %46, %48 : vector<32x128xf32>
    %cst_29 = arith.constant 5.000000e-01 : f32
    %50 = vector.broadcast %cst_29 : f32 to vector<32x128xf32>
    %51 = arith.mulf %50, %49 : vector<32x128xf32>
    %cst_30 = arith.constant 4.471500e-02 : f32
    %52 = vector.broadcast %cst_30 : f32 to vector<32x128xf32>
    %53 = arith.mulf %52, %49 : vector<32x128xf32>
    %54 = arith.mulf %53, %49 : vector<32x128xf32>
    %55 = arith.mulf %54, %49 : vector<32x128xf32>
    %56 = arith.addf %49, %55 : vector<32x128xf32>
    %cst_31 = arith.constant 0.797884583 : f32
    %57 = vector.broadcast %cst_31 : f32 to vector<32x128xf32>
    %58 = arith.mulf %57, %56 : vector<32x128xf32>
    %59 = math.tanh %58 : vector<32x128xf32>
    %cst_32 = arith.constant 1.000000e+00 : f32
    %60 = vector.broadcast %cst_32 : f32 to vector<32x128xf32>
    %61 = arith.addf %60, %59 : vector<32x128xf32>
    %62 = arith.mulf %51, %61 : vector<32x128xf32>
    %63 = arith.truncf %62 : vector<32x128xf32> to vector<32x128xbf16>
    %c0_33 = arith.constant 0 : index
    %c0_34 = arith.constant 0 : index
    %64 = vector.load %arg6[%c0_33, %c0_34] : memref<128x128xbf16, #tpu.memory_space<vmem>>, vector<128x128xbf16>
    %cst_35 = arith.constant dense<0.000000e+00> : vector<32x128xf32>
    %65 = tpu.matmul %63, %64, %cst_35 {dimension_numbers = #tpu.dot_dimension_numbers<[1], [0], [0], [1], [0, 0, 1, 1], [], []>} : vector<32x128xbf16>, vector<128x128xbf16>, vector<32x128xf32> -> vector<32x128xf32>
    %c0_36 = arith.constant 0 : index
    %c0_37 = arith.constant 0 : index
    %66 = vector.load %arg10[%c0_36, %c0_37] : memref<1x128xf32, #tpu.memory_space<vmem>>, vector<1x128xf32>
    %67 = vector.broadcast %66 : vector<1x128xf32> to vector<32x128xf32>
    %68 = arith.addf %65, %67 : vector<32x128xf32>
    %cst_38 = arith.constant 5.000000e-01 : f32
    %69 = vector.broadcast %cst_38 : f32 to vector<32x128xf32>
    %70 = arith.mulf %69, %68 : vector<32x128xf32>
    %cst_39 = arith.constant 4.471500e-02 : f32
    %71 = vector.broadcast %cst_39 : f32 to vector<32x128xf32>
    %72 = arith.mulf %71, %68 : vector<32x128xf32>
    %73 = arith.mulf %72, %68 : vector<32x128xf32>
    %74 = arith.mulf %73, %68 : vector<32x128xf32>
    %75 = arith.addf %68, %74 : vector<32x128xf32>
    %cst_40 = arith.constant 0.797884583 : f32
    %76 = vector.broadcast %cst_40 : f32 to vector<32x128xf32>
    %77 = arith.mulf %76, %75 : vector<32x128xf32>
    %78 = math.tanh %77 : vector<32x128xf32>
    %cst_41 = arith.constant 1.000000e+00 : f32
    %79 = vector.broadcast %cst_41 : f32 to vector<32x128xf32>
    %80 = arith.addf %79, %78 : vector<32x128xf32>
    %81 = arith.mulf %70, %80 : vector<32x128xf32>
    %82 = arith.truncf %62 : vector<32x128xf32> to vector<32x128xbf16>
    %c0_42 = arith.constant 0 : index
    %c0_43 = arith.constant 0 : index
    %83 = vector.load %arg12[%c0_42, %c0_43] : memref<32x128xbf16, #tpu.memory_space<vmem>>, vector<32x128xbf16>
    tpu.vector_store %arg12[%c0_42, %c0_43], %82 {strides = array<i32>} : memref<32x128xbf16, #tpu.memory_space<vmem>>, vector<32x128xbf16>,
    %84 = arith.truncf %81 : vector<32x128xf32> to vector<32x128xbf16>
    %c0_44 = arith.constant 0 : index
    %c0_45 = arith.constant 0 : index
    %85 = vector.load %arg14[%c0_44, %c0_45] : memref<32x128xbf16, #tpu.memory_space<vmem>>, vector<32x128xbf16>
    tpu.vector_store %arg14[%c0_44, %c0_45], %84 {strides = array<i32>} : memref<32x128xbf16, #tpu.memory_space<vmem>>, vector<32x128xbf16>,
    return
  }
  func.func @transform_0(%arg0: i32) -> (i32, i32) {
    %c0_i32 = arith.constant 0 : i32
    %c0_i32_0 = arith.constant 0 : i32
    return %arg0, %c0_i32 : i32, i32
  }
  func.func @transform_1(%arg0: i32) -> (i32, i32) {
    %c0_i32 = arith.constant 0 : i32
    %c0_i32_0 = arith.constant 0 : i32
    return %arg0, %c0_i32 : i32, i32
  }
  func.func @transform_2(%arg0: i32) -> (i32, i32) {
    %c0_i32 = arith.constant 0 : i32
    %c0_i32_0 = arith.constant 0 : i32
    %c0_i32_1 = arith.constant 0 : i32
    return %c0_i32, %c0_i32_0 : i32, i32
  }
  func.func @transform_3(%arg0: i32) -> (i32, i32) {
    %c0_i32 = arith.constant 0 : i32
    %c0_i32_0 = arith.constant 0 : i32
    %c0_i32_1 = arith.constant 0 : i32
    return %c0_i32, %c0_i32_0 : i32, i32
  }
  func.func @transform_4(%arg0: i32) -> (i32, i32) {
    %c0_i32 = arith.constant 0 : i32
    %c0_i32_0 = arith.constant 0 : i32
    %c0_i32_1 = arith.constant 0 : i32
    return %c0_i32, %c0_i32_0 : i32, i32
  }
  func.func @transform_5(%arg0: i32) -> (i32, i32) {
    %c0_i32 = arith.constant 0 : i32
    %c0_i32_0 = arith.constant 0 : i32
    %c0_i32_1 = arith.constant 0 : i32
    return %c0_i32, %c0_i32_0 : i32, i32
  }
  func.func @transform_6(%arg0: i32) -> (i32, i32) {
    %c0_i32 = arith.constant 0 : i32
    %c0_i32_0 = arith.constant 0 : i32
    %c0_i32_1 = arith.constant 0 : i32
    return %c0_i32, %c0_i32_0 : i32, i32
  }
  func.func @transform_7(%arg0: i32) -> (i32, i32) {
    %c0_i32 = arith.constant 0 : i32
    %c0_i32_0 = arith.constant 0 : i32
    %c0_i32_1 = arith.constant 0 : i32
    return %c0_i32, %c0_i32_0 : i32, i32
  }
  func.func @transform_8(%arg0: i32) -> (i32, i32) {
    %c0_i32 = arith.constant 0 : i32
    %c0_i32_0 = arith.constant 0 : i32
    %c0_i32_1 = arith.constant 0 : i32
    return %c0_i32, %c0_i32_0 : i32, i32
  }
  func.func @transform_9(%arg0: i32) -> (i32, i32) {
    %c0_i32 = arith.constant 0 : i32
    %c0_i32_0 = arith.constant 0 : i32
    %c0_i32_1 = arith.constant 0 : i32
    return %c0_i32, %c0_i32_0 : i32, i32
  }
  func.func @transform_10(%arg0: i32) -> (i32, i32) {
    %c0_i32 = arith.constant 0 : i32
    %c0_i32_0 = arith.constant 0 : i32
    return %arg0, %c0_i32 : i32, i32
  }
  func.func @transform_11(%arg0: i32) -> (i32, i32) {
    %c0_i32 = arith.constant 0 : i32
    %c0_i32_0 = arith.constant 0 : i32
    return %arg0, %c0_i32 : i32, i32
  }
  func.func @transform_12(%arg0: i32) -> (i32, i32) {
    %c0_i32 = arith.constant 0 : i32
    %c0_i32_0 = arith.constant 0 : i32
    return %arg0, %c0_i32 : i32, i32
  }
  func.func @transform_13(%arg0: i32) -> (i32, i32) {
    %c0_i32 = arith.constant 0 : i32
    %c0_i32_0 = arith.constant 0 : i32
    return %arg0, %c0_i32 : i32, i32
  }
}

</mosaic_0001>

<bundles_post_ra>
// kernel: dcf_t_forward.1
= control target key start
LH: loop header
LB: loop body
LE: loop exit
PB: predicated region body
PF: predicated region fallthrough
CT: control target
= control target key end

     0   :  { %s1794_s25 = smov 0   ;;  %s1965_s0 = inlined_call_operand.vmem [shape: f32[64,128], index: 0, kind: input, shape index: {}]   ;;  %s1966_s1 = inlined_call_operand.vmem [shape: f32[64,128], index: 1, kind: input, shape index: {}]   ;;  %s1967_s2 = inlined_call_operand.vmem [shape: bf16[128,128], index: 2, kind: input, shape index: {}]   ;;  %s1968_s3 = inlined_call_operand.vmem [shape: bf16[128,128], index: 3, kind: input, shape index: {}]   ;;  %s1969_s4 = inlined_call_operand.vmem [shape: bf16[128,128], index: 4, kind: input, shape index: {}]   ;;  %s1970_s5 = inlined_call_operand.vmem [shape: bf16[128,128], index: 5, kind: input, shape index: {}]   ;;  %s1971_s6 = inlined_call_operand.vmem [shape: f32[1,128], index: 6, kind: input, shape index: {}]   ;;  %s1972_s7 = inlined_call_operand.vmem [shape: f32[1,128], index: 7, kind: input, shape index: {}]   ;;  %s1973_s8 = inlined_call_operand.vmem [shape: f32[1,128], index: 8, kind: input, shape index: {}]   ;;  %s1974_s9 = inlined_call_operand.vmem [shape: f32[1,128], index: 9, kind: input, shape index: {}]   ;;  %s1975_s10 = inlined_call_operand.vmem [shape: bf16[64,128], index: 10, kind: output, shape index: {0}]   ;;  %s1976_s11 = inlined_call_operand.vmem [shape: bf16[64,128], index: 11, kind: output, shape index: {1}]   ;;  %s1977_s12 = inlined_call_operand.vmem [shape: bf16[64,128], index: 12, kind: output, shape index: {2}]   ;;  %s1978_s13 = inlined_call_operand.vmem [shape: bf16[64,128], index: 13, kind: output, shape index: {3}]  }
   0x1 LB: > { %s1393_s26 = sadd.s32 4294967295, %s1722_s25   ;;  %p1397_p0 = scmp.ge.s32.totalorder %s1722_s25, 1  ;;  %s1722_s25 = sphi %s1794_s25, %s24_s25  }
   0x2   : > { %p406_p1 = scmp.lt.s32.totalorder %s1722_s25, 3 }
   0x4   : > { %p407_p2 = pnand %p1397_p0, %p406_p1 }
   0x5   : > { %s1398_s29 = sshll.u32 (!%p407_p2), %s1393_s26, 2 }
   0x6   : > { %410 = sbr.rel (%p407_p2) target bundleno = 540 (0x21c), region = 60  ;;  %p471_p3 = scmp.lt.s32.totalorder (!%p407_p2), %s1398_s29, 7 }
   0xb   : > { %v1652_v0 = vld [vmem:[%s1967_s2 + $0x38] sm:$0xff]   ;;  %v1653_v1 = vld [vmem:[%s1967_s2 + $0x30] sm:$0xff]   ;;  %s1980_s29 = smov (!%p471_p3, %s1398_s29), 7  ;;  %v1654_v2 = vld [vmem:[%s1967_s2 + $0x28] sm:$0xff]  }
   0xc   : > { %1564 = vmatprep.subr.bf16.mxu0 %v1652_v0  ;;  %s1399_s17 = sshll.u32 %s1980_s29, 3  ;;  %v1655_v3 = vld [vmem:[%s1967_s2 + $0x20] sm:$0xff]   ;;  %v1656_v7 = vld [vmem:[%s1967_s2 + $0x18] sm:$0xff]   ;;  %v1657_v8 = vld [vmem:[%s1967_s2 + $0x10] sm:$0xff]   ;;  %s1904_s28 = sshll.u32 %s1980_s29, 2 }
   0xd   : > { %1565 = vmatpush3.bf16.msra.mxu0 %v1652_v0  ;;  %s474_s20 = scalar_lea.vmem %s1965_s0, %s1399_s17  ;;  %v1658_v9 = vld [vmem:[%s1967_s2 + $0x8] sm:$0xff]   ;;  %v1659_v10 = vld [vmem:[%s1967_s2] sm:$0xff]   ;;  %s1835_s19 = scalar_lea.vmem %s1966_s1, %s1399_s17  ;;  %v1660_v13 = vld [vmem:[%s1968_s3 + $0x38] sm:$0xff]  }
   0xe   : > { %1566 = vmatprep.subr.bf16.mxu0 %v1653_v1  ;;  %v507_v4 = vld [vmem:[%s474_s20] sm:$0xff]  ;;  %v508_v5 = vld [vmem:[%s474_s20 + $0x8] sm:$0xff]  ;;  %v509_v11 = vld [vmem:[%s474_s20 + $0x10] sm:$0xff]  ;;  %s486_s15 = scalar_lea.vmem %s1975_s10, %s1904_s28  ;;  %s492_s16 = scalar_lea.vmem %s1976_s11, %s1904_s28 }
   0xf   : > { %v511_v6 = vpack.c.bf16 %v508_v5, %v507_v4  ;;  %v510_v12 = vld [vmem:[%s474_s20 + $0x18] sm:$0xff]  ;;  %v865_v14 = vld [vmem:[%s1835_s19] sm:$0xff]  ;;  %v866_v15 = vld [vmem:[%s1835_s19 + $0x8] sm:$0xff]  ;;  %s498_s24 = scalar_lea.vmem %s1977_s12, %s1904_s28 }
  0x10   : > { %v512_v16 = vpack.c.bf16 %v510_v12, %v509_v11  ;;  %v869_v17 = vpack.c.bf16 %v866_v15, %v865_v14  ;;  %v1661_v18 = vld [vmem:[%s1968_s3 + $0x30] sm:$0xff]   ;;  %v1662_v19 = vld [vmem:[%s1968_s3 + $0x28] sm:$0xff]   ;;  %v1663_v20 = vld [vmem:[%s1968_s3 + $0x20] sm:$0xff]  }
  0x11   : > { %1567 = vmatpush3.bf16.msra.mxu0 %v1653_v1  ;;  %1580 = vmatprep.mubr.bf16.mxu0 %v511_v6  ;;  %v1664_v21 = vld [vmem:[%s1968_s3 + $0x18] sm:$0xff]   ;;  %v1665_v22 = vld [vmem:[%s1968_s3 + $0x10] sm:$0xff]   ;;  %v1666_v23 = vld [vmem:[%s1968_s3 + $0x8] sm:$0xff]  }
  0x12   : > { %1568 = vmatprep.subr.bf16.mxu0 %v1654_v2  ;;  %v1667_v24 = vld [vmem:[%s1968_s3] sm:$0xff]   ;;  %v867_v25 = vld [vmem:[%s1835_s19 + $0x10] sm:$0xff]  ;;  %v868_v26 = vld [vmem:[%s1835_s19 + $0x18] sm:$0xff]  ;;  %s504_s19 = scalar_lea.vmem %s1978_s13, %s1904_s28 }
  0x13   : > { %v870_v27 = vpack.c.bf16 %v868_v26, %v867_v25  ;;  %v1668_v28 = vld [vmem:[%s1969_s4 + $0x38] sm:$0xff]   ;;  %v1669_v29 = vld [vmem:[%s1969_s4 + $0x30] sm:$0xff]   ;;  %v1670_v30 = vld [vmem:[%s1969_s4 + $0x28] sm:$0xff]  }
  0x14   : > { %1584 = vmatprep.subr.bf16.mxu1 %v1668_v28  ;;  %v1671_v31 = vld [vmem:[%s1969_s4 + $0x20] sm:$0xff]   ;;  %v1672_v32 = vld [vmem:[%s1969_s4 + $0x18] sm:$0xff]   ;;  %v1673_v33 = vld [vmem:[%s1969_s4 + $0x10] sm:$0xff]  }
  0x15   : > { %1569 = vmatpush3.bf16.msra.mxu0 %v1654_v2  ;;  %1585 = vmatpush3.bf16.msra.mxu1 %v1668_v28  ;;  %v1674_v34 = vld [vmem:[%s1969_s4 + $0x8] sm:$0xff]   ;;  %v1675_v35 = vld [vmem:[%s1969_s4] sm:$0xff]   ;;  %v1892_v36 = vld [vmem:[%s1970_s5 + $0x38] sm:$0xff]  }
  0x16   : > { %1570 = vmatprep.subr.bf16.mxu0 %v1655_v3  ;;  %1586 = vmatprep.subr.bf16.mxu1 %v1669_v29  ;;  %v1410_v37 = vld [vmem:[%s1971_s6] ss:$0 sm:$0xff] }
  0x17   : > { %v1436_v5 = vld [vmem:[%s1972_s7] ss:$0 sm:$0xff] }
  0x19   : > { %1571 = vmatpush3.bf16.msra.mxu0 %v1655_v3  ;;  %1587 = vmatpush3.bf16.msra.mxu1 %v1669_v29 }
  0x1a   : > { %1572 = vmatprep.subr.bf16.mxu0 %v1656_v7  ;;  %1588 = vmatprep.subr.bf16.mxu1 %v1670_v30 }
  0x1d   : > { %1573 = vmatpush3.bf16.msra.mxu0 %v1656_v7  ;;  %1589 = vmatpush3.bf16.msra.mxu1 %v1670_v30 }
  0x1e   : > { %1574 = vmatprep.subr.bf16.mxu0 %v1657_v8  ;;  %1590 = vmatprep.subr.bf16.mxu1 %v1671_v31 }
  0x21   : > { %1575 = vmatpush3.bf16.msra.mxu0 %v1657_v8  ;;  %1591 = vmatpush3.bf16.msra.mxu1 %v1671_v31  ;;  %v1677_v31 = vld [vmem:[%s1970_s5 + $0x30] sm:$0xff]  }
  0x22   : > { %1576 = vmatprep.subr.bf16.mxu0 %v1658_v9  ;;  %1592 = vmatprep.subr.bf16.mxu1 %v1672_v32 }
  0x25   : > { %1577 = vmatpush3.bf16.msra.mxu0 %v1658_v9  ;;  %1593 = vmatpush3.bf16.msra.mxu1 %v1672_v32 }
  0x26   : > { %1578 = vmatprep.subr.bf16.mxu0 %v1659_v10  ;;  %1594 = vmatprep.subr.bf16.mxu1 %v1673_v33 }
  0x29   : > { %1579 = vmatpush3.bf16.msra.mxu0 %v1659_v10  ;;  %1595 = vmatpush3.bf16.msra.mxu1 %v1673_v33 }
  0x2a   : > { %1604 = vmatprep.subr.bf16.mxu0 %v1660_v13  ;;  %1596 = vmatprep.subr.bf16.mxu1 %v1674_v34 }
  0x2c   : > { %1581 = vmatmul.mubr.bf16.vlgmr.msra.gmra.mxu0 %v512_v16 }
  0x2d   : > { %1605 = vmatpush3.bf16.msra.mxu0 %v1660_v13  ;;  %1620 = vmatprep.mubr.bf16.mxu0 %v869_v17 }
  0x2e   : > { %1606 = vmatprep.subr.bf16.mxu0 %v1661_v18  ;;  %1597 = vmatpush3.bf16.msra.mxu1 %v1674_v34 }
  0x2f   : > { %1598 = vmatprep.subr.bf16.mxu1 %v1675_v35 }
  0x31   : > { %1607 = vmatpush3.bf16.msra.mxu0 %v1661_v18 }
  0x32   : > { %1608 = vmatprep.subr.bf16.mxu0 %v1662_v19  ;;  %1599 = vmatpush3.bf16.msra.mxu1 %v1675_v35 }
  0x33   : > { %1624 = vmatprep.subr.bf16.mxu1 %v1892_v36 }
  0x35   : > { %1609 = vmatpush3.bf16.msra.mxu0 %v1662_v19 }
  0x36   : > { %1610 = vmatprep.subr.bf16.mxu0 %v1663_v20 }
  0x39   : > { %1611 = vmatpush3.bf16.msra.mxu0 %v1663_v20 }
  0x3a   : > { %1612 = vmatprep.subr.bf16.mxu0 %v1664_v21 }
  0x3d   : > { %1613 = vmatpush3.bf16.msra.mxu0 %v1664_v21 }
  0x3e   : > { %1614 = vmatprep.subr.bf16.mxu0 %v1665_v22 }
  0x41   : > { %1615 = vmatpush3.bf16.msra.mxu0 %v1665_v22 }
  0x42   : > { %1616 = vmatprep.subr.bf16.mxu0 %v1666_v23 }
  0x45   : > { %1617 = vmatpush3.bf16.msra.mxu0 %v1666_v23 }
  0x46   : > { %1618 = vmatprep.subr.bf16.mxu0 %v1667_v24 }
  0x49   : > { %1619 = vmatpush3.bf16.msra.mxu0 %v1667_v24 }
  0x4c   : > { %1621 = vmatmul.mubr.bf16.vlgmr.msra.gmra.mxu0 %v870_v27 }
  0xec   : > { %v1582_v38 = vpop.f32.mrf.mxu0 }
  0xed   : > { %v627_v39 = vadd.f32 %v1582_v38, %v1410_v37 }
  0xee   : > { %v618_v40 = vpop.f32.mrf.mxu0 }
  0xef   : > { %v639_v41 = vmul.f32 0.044715, %v627_v39  ;;  %v619_v42 = vadd.f32 %v1410_v37, %v618_v40  ;;  %v635_v17 = vmul.f32 0.5, %v627_v39 }
  0xf0   : > { %v1583_v43 = vpop.f32.mrf.mxu0 }
  0xf1   : > { %v643_v44 = vmul.f32 %v639_v41, %v627_v39  ;;  %v637_v45 = vmul.f32 0.044715, %v619_v42  ;;  %v630_v46 = vadd.f32 %v1583_v43, %v1410_v37  ;;  %v633_v13 = vmul.f32 0.5, %v619_v42  ;;  %v1678_v41 = vld [vmem:[%s1970_s5 + $0x28] sm:$0xff]  }
  0xf2   : > { %v621_v47 = vpop.f32.mrf.mxu0 }
  0xf3   : > { %v647_v48 = vmul.f32 %v643_v44, %v627_v39  ;;  %v641_v49 = vmul.f32 %v637_v45, %v619_v42  ;;  %v640_v50 = vmul.f32 0.044715, %v630_v46  ;;  %v622_v51 = vadd.f32 %v1410_v37, %v621_v47 }
  0xf4   : > { %v636_v10 = vmul.f32 0.5, %v630_v46 }
  0xf5   : > { %v644_v52 = vmul.f32 %v640_v50, %v630_v46  ;;  %v638_v53 = vmul.f32 0.044715, %v622_v51  ;;  %v645_v54 = vmul.f32 %v641_v49, %v619_v42  ;;  %v651_v55 = vadd.f32 %v647_v48, %v627_v39  ;;  %v1679_v49 = vld [vmem:[%s1970_s5 + $0x20] sm:$0xff]  }
  0xf6   : > { %v634_v14 = vmul.f32 0.5, %v622_v51 }
  0xf7   : > { %v648_v56 = vmul.f32 %v644_v52, %v630_v46  ;;  %v642_v57 = vmul.f32 %v638_v53, %v622_v51  ;;  %v649_v58 = vadd.f32 %v645_v54, %v619_v42  ;;  %v655_v59 = vmul.f32 0.7978846, %v651_v55  ;;  %v1680_v52 = vld [vmem:[%s1970_s5 + $0x18] sm:$0xff]   ;;  %v1681_v53 = vld [vmem:[%s1970_s5 + $0x10] sm:$0xff]   ;;  %v1682_v54 = vld [vmem:[%s1970_s5 + $0x8] sm:$0xff]  }
  0xf9   : > { %v646_v60 = vmul.f32 %v642_v57, %v622_v51  ;;  %v653_v61 = vmul.f32 0.7978846, %v649_v58  ;;  %v652_v62 = vadd.f32 %v648_v56, %v630_v46  ;;  %v1683_v58 = vld [vmem:[%s1970_s5] sm:$0xff]  }
  0xfb   : > { %v650_v63 = vadd.f32 %v646_v60, %v622_v51  ;;  %1684 = vtanh.f32 %v653_v61  ;;  %v656_v0 = vmul.f32 0.7978846, %v652_v62 }
  0xfc   : > { %1686 = vtanh.f32 %v655_v59 }
  0xfd   : > { %v654_v1 = vmul.f32 0.7978846, %v650_v63  ;;  %1688 = vtanh.f32 %v656_v0 }
  0xff   : > { %1690 = vtanh.f32 %v654_v1 }
 0x108   : > { %v1685_v2 = vpop.eup %1684 }
 0x109   : > { %v1687_v3 = vpop.eup %1686  ;;  %v661_v6 = vadd.f32 1.0, %v1685_v2 }
 0x10a   : > { %v1689_v4 = vpop.eup %1688  ;;  %v663_v11 = vadd.f32 1.0, %v1687_v3 }
 0x10b   : > { %v664_v7 = vadd.f32 1.0, %v1689_v4  ;;  %v665_v21 = vmul.f32 %v661_v6, %v633_v13 }
 0x10c   : > { %v1691_v8 = vpop.eup %1690  ;;  %v1622_v9 = vpop.f32.mrf.mxu0  ;;  %v667_v24 = vmul.f32 %v663_v11, %v635_v17 }
 0x10d   : > { %v1901_v12 = vadd.f32 %v1622_v9, %v1436_v5  ;;  %v662_v15 = vadd.f32 1.0, %v1691_v8  ;;  %v668_v18 = vmul.f32 %v664_v7, %v636_v10  ;;  %v1419_v10 = vld [vmem:[%s1973_s8] ss:$0 sm:$0xff] }
 0x10e   : > { %v976_v16 = vpop.f32.mrf.mxu0 }
 0x10f   : > { %v997_v19 = vmul.f32 0.044715, %v1901_v12  ;;  %v1907_v20 = vadd.f32 %v1436_v5, %v976_v16  ;;  %v666_v22 = vmul.f32 %v662_v15, %v634_v14  ;;  %v670_v30 = vpack.c.bf16 %v668_v18, %v667_v24 }
 0x110   : > { %v1623_v23 = vpop.f32.mrf.mxu0  ;;  %v993_v3 = vmul.f32 0.5, %v1901_v12 }
 0x111   : > { %v1001_v25 = vmul.f32 %v997_v19, %v1901_v12  ;;  %v995_v26 = vmul.f32 0.044715, %v1907_v20  ;;  %v988_v27 = vadd.f32 %v1623_v23, %v1436_v5  ;;  %v669_v28 = vpack.c.bf16 %v666_v22, %v665_v21  ;;  %1520 = vst [vmem:[%s486_s15 + $0x8] sm:$0xff] %v670_v30  }
 0x112   : > { %v979_v29 = vpop.f32.mrf.mxu0  ;;  %v991_v0 = vmul.f32 0.5, %v1907_v20 }
 0x113   : > { %v1005_v32 = vmul.f32 %v1001_v25, %v1901_v12  ;;  %v999_v33 = vmul.f32 %v995_v26, %v1907_v20  ;;  %v998_v34 = vmul.f32 0.044715, %v988_v27  ;;  %v980_v35 = vadd.f32 %v1436_v5, %v979_v29  ;;  %1600 = vmatprep.mubr.bf16.mxu1 %v669_v28  ;;  %1484 = vst [vmem:[%s486_s15] sm:$0xff] %v669_v28  }
 0x114   : > { %1601 = vmatmul.mubr.bf16.vlgmr.msra.gmra.mxu1 %v670_v30  ;;  %v994_v62 = vmul.f32 0.5, %v988_v27 }
 0x115   : > { %v1009_v37 = vadd.f32 %v1005_v32, %v1901_v12  ;;  %v1003_v38 = vmul.f32 %v999_v33, %v1907_v20  ;;  %v1002_v39 = vmul.f32 %v998_v34, %v988_v27  ;;  %v996_v40 = vmul.f32 0.044715, %v980_v35  ;;  %1625 = vmatpush3.bf16.msra.mxu1 %v1892_v36 }
 0x116   : > { %1626 = vmatprep.subr.bf16.mxu1 %v1677_v31  ;;  %v992_v1 = vmul.f32 0.5, %v980_v35 }
 0x117   : > { %v1006_v42 = vmul.f32 %v1002_v39, %v988_v27  ;;  %v1000_v43 = vmul.f32 %v996_v40, %v980_v35  ;;  %v1007_v44 = vadd.f32 %v1003_v38, %v1907_v20  ;;  %v1013_v45 = vmul.f32 0.7978846, %v1009_v37 }
 0x119   : > { %v1010_v46 = vadd.f32 %v1006_v42, %v988_v27  ;;  %v1004_v47 = vmul.f32 %v1000_v43, %v980_v35  ;;  %1627 = vmatpush3.bf16.msra.mxu1 %v1677_v31  ;;  %v1011_v48 = vmul.f32 0.7978846, %v1007_v44  ;;  %v1445_v43 = vld [vmem:[%s1974_s9] ss:$0 sm:$0xff] }
 0x11a   : > { %1628 = vmatprep.subr.bf16.mxu1 %v1678_v41 }
 0x11b   : > { %v1014_v36 = vmul.f32 0.7978846, %v1010_v46  ;;  %v1008_v50 = vadd.f32 %v1004_v47, %v980_v35  ;;  %1692 = vtanh.f32 %v1011_v48 }
 0x11c   : > { %1694 = vtanh.f32 %v1013_v45 }
 0x11d   : > { %1696 = vtanh.f32 %v1014_v36  ;;  %1629 = vmatpush3.bf16.msra.mxu1 %v1678_v41  ;;  %v1012_v51 = vmul.f32 0.7978846, %v1008_v50 }
 0x11e   : > { %1630 = vmatprep.subr.bf16.mxu1 %v1679_v49 }
 0x11f   : > { %1698 = vtanh.f32 %v1012_v51 }
 0x121   : > { %1631 = vmatpush3.bf16.msra.mxu1 %v1679_v49 }
 0x122   : > { %1632 = vmatprep.subr.bf16.mxu1 %v1680_v52 }
 0x125   : > { %1633 = vmatpush3.bf16.msra.mxu1 %v1680_v52 }
 0x126   : > { %1634 = vmatprep.subr.bf16.mxu1 %v1681_v53 }
 0x128   : > { %v1693_v55 = vpop.eup %1692 }
 0x129   : > { %v1695_v56 = vpop.eup %1694  ;;  %1635 = vmatpush3.bf16.msra.mxu1 %v1681_v53  ;;  %v1019_v59 = vadd.f32 1.0, %v1693_v55 }
 0x12a   : > { %v1697_v57 = vpop.eup %1696  ;;  %1636 = vmatprep.subr.bf16.mxu1 %v1682_v54  ;;  %v1021_v63 = vadd.f32 1.0, %v1695_v56 }
 0x12b   : > { %v1022_v60 = vadd.f32 1.0, %v1697_v57  ;;  %v1023_v5 = vmul.f32 %v1019_v59, %v991_v0 }
 0x12c   : > { %v1699_v61 = vpop.eup %1698  ;;  %v1025_v7 = vmul.f32 %v1021_v63, %v993_v3 }
 0x12d   : > { %1637 = vmatpush3.bf16.msra.mxu1 %v1682_v54  ;;  %v1020_v2 = vadd.f32 1.0, %v1699_v61  ;;  %v1026_v4 = vmul.f32 %v1022_v60, %v994_v62 }
 0x12e   : > { %1638 = vmatprep.subr.bf16.mxu1 %v1683_v58 }
 0x12f   : > { %v1024_v6 = vmul.f32 %v1020_v2, %v992_v1  ;;  %v1028_v9 = vpack.c.bf16 %v1026_v4, %v1025_v7 }
 0x131   : > { %1639 = vmatpush3.bf16.msra.mxu1 %v1683_v58  ;;  %v1027_v8 = vpack.c.bf16 %v1024_v6, %v1023_v5  ;;  %1522 = vst [vmem:[%s492_s16 + $0x8] sm:$0xff] %v1028_v9  }
 0x133   : > { %1640 = vmatprep.mubr.bf16.mxu1 %v1027_v8  ;;  %1504 = vst [vmem:[%s492_s16] sm:$0xff] %v1027_v8  }
 0x134   : > { %1641 = vmatmul.mubr.bf16.vlgmr.msra.gmra.mxu1 %v1028_v9 }
 0x1d4   : > { %v1602_v11 = vpop.f32.mrf.mxu1 }
 0x1d5   : > { %v785_v12 = vadd.f32 %v1602_v11, %v1419_v10 }
 0x1d6   : > { %v776_v13 = vpop.f32.mrf.mxu1 }
 0x1d7   : > { %v797_v14 = vmul.f32 0.044715, %v785_v12  ;;  %v777_v15 = vadd.f32 %v1419_v10, %v776_v13  ;;  %v793_v54 = vmul.f32 0.5, %v785_v12 }
 0x1d8   : > { %v1603_v16 = vpop.f32.mrf.mxu1 }
 0x1d9   : > { %v801_v17 = vmul.f32 %v797_v14, %v785_v12  ;;  %v795_v18 = vmul.f32 0.044715, %v777_v15  ;;  %v788_v19 = vadd.f32 %v1603_v16, %v1419_v10  ;;  %v791_v50 = vmul.f32 0.5, %v777_v15 }
 0x1da   : > { %v779_v20 = vpop.f32.mrf.mxu1 }
 0x1db   : > { %v805_v21 = vmul.f32 %v801_v17, %v785_v12  ;;  %v799_v22 = vmul.f32 %v795_v18, %v777_v15  ;;  %v798_v23 = vmul.f32 0.044715, %v788_v19  ;;  %v780_v24 = vadd.f32 %v1419_v10, %v779_v20 }
 0x1dc   : > { %v794_v49 = vmul.f32 0.5, %v788_v19 }
 0x1dd   : > { %v809_v25 = vadd.f32 %v805_v21, %v785_v12  ;;  %v803_v26 = vmul.f32 %v799_v22, %v777_v15  ;;  %v802_v27 = vmul.f32 %v798_v23, %v788_v19  ;;  %v796_v28 = vmul.f32 0.044715, %v780_v24 }
 0x1de   : > { %v792_v51 = vmul.f32 0.5, %v780_v24 }
 0x1df   : > { %v813_v29 = vmul.f32 0.7978846, %v809_v25  ;;  %v807_v30 = vadd.f32 %v803_v26, %v777_v15  ;;  %v806_v31 = vmul.f32 %v802_v27, %v788_v19  ;;  %v800_v32 = vmul.f32 %v796_v28, %v780_v24 }
 0x1e1   : > { %v811_v33 = vmul.f32 0.7978846, %v807_v30  ;;  %v810_v34 = vadd.f32 %v806_v31, %v788_v19  ;;  %v804_v35 = vmul.f32 %v800_v32, %v780_v24  ;;  %1700 = vtanh.f32 %v813_v29 }
 0x1e3   : > { %v814_v37 = vmul.f32 0.7978846, %v810_v34  ;;  %1702 = vtanh.f32 %v811_v33  ;;  %v808_v38 = vadd.f32 %v804_v35, %v780_v24 }
 0x1e5   : > { %1704 = vtanh.f32 %v814_v37  ;;  %v812_v39 = vmul.f32 0.7978846, %v808_v38 }
 0x1e7   : > { %1706 = vtanh.f32 %v812_v39 }
 0x1ee   : > { %v1701_v40 = vpop.eup %1700 }
 0x1ef   : > { %v821_v48 = vadd.f32 1.0, %v1701_v40 }
 0x1f0   : > { %v1703_v41 = vpop.eup %1702 }
 0x1f1   : > { %v819_v45 = vadd.f32 1.0, %v1703_v41  ;;  %v825_v61 = vmul.f32 %v821_v48, %v793_v54 }
 0x1f2   : > { %v1705_v42 = vpop.eup %1704 }
 0x1f3   : > { %v822_v44 = vadd.f32 1.0, %v1705_v42  ;;  %v823_v58 = vmul.f32 %v819_v45, %v791_v50 }
 0x1f4   : > { %v1642_v46 = vpop.f32.mrf.mxu1  ;;  %v1707_v47 = vpop.eup %1706 }
 0x1f5   : > { %v1143_v36 = vadd.f32 %v1642_v46, %v1445_v43  ;;  %v820_v52 = vadd.f32 1.0, %v1707_v47  ;;  %v826_v55 = vmul.f32 %v822_v44, %v794_v49 }
 0x1f6   : > { %v1134_v53 = vpop.f32.mrf.mxu1 }
 0x1f7   : > { %v1155_v56 = vmul.f32 0.044715, %v1143_v36  ;;  %v1135_v57 = vadd.f32 %v1445_v43, %v1134_v53  ;;  %v824_v59 = vmul.f32 %v820_v52, %v792_v51  ;;  %v1498_v3 = vpack.c.bf16 %v826_v55, %v825_v61 }
 0x1f8   : > { %v1643_v60 = vpop.f32.mrf.mxu1  ;;  %v1151_v33 = vmul.f32 0.5, %v1143_v36 }
 0x1f9   : > { %v1159_v62 = vmul.f32 %v1155_v56, %v1143_v36  ;;  %v1153_v63 = vmul.f32 0.044715, %v1135_v57  ;;  %v1146_v0 = vadd.f32 %v1643_v60, %v1445_v43  ;;  %v1493_v1 = vpack.c.bf16 %v824_v59, %v823_v58  ;;  %1521 = vst [vmem:[%s498_s24 + $0x8] sm:$0xff] %v1498_v3  }
 0x1fa   : > { %v1137_v2 = vpop.f32.mrf.mxu1  ;;  %v1149_v30 = vmul.f32 0.5, %v1135_v57 }
 0x1fb   : > { %v1163_v4 = vmul.f32 %v1159_v62, %v1143_v36  ;;  %v1157_v5 = vmul.f32 %v1153_v63, %v1135_v57  ;;  %v1156_v6 = vmul.f32 0.044715, %v1146_v0  ;;  %1494 = vst [vmem:[%s498_s24] sm:$0xff] %v1493_v1   ;;  %v1138_v7 = vadd.f32 %v1445_v43, %v1137_v2 }
 0x1fc   : > { %v1152_v29 = vmul.f32 0.5, %v1146_v0 }
 0x1fd   : > { %v1167_v8 = vadd.f32 %v1163_v4, %v1143_v36  ;;  %v1161_v9 = vmul.f32 %v1157_v5, %v1135_v57  ;;  %v1160_v10 = vmul.f32 %v1156_v6, %v1146_v0  ;;  %v1154_v11 = vmul.f32 0.044715, %v1138_v7 }
 0x1fe   : > { %v1150_v31 = vmul.f32 0.5, %v1138_v7 }
 0x1ff   : > { %v1171_v12 = vmul.f32 0.7978846, %v1167_v8  ;;  %v1165_v13 = vadd.f32 %v1161_v9, %v1135_v57  ;;  %v1164_v14 = vmul.f32 %v1160_v10, %v1146_v0  ;;  %v1158_v15 = vmul.f32 %v1154_v11, %v1138_v7 }
 0x201   : > { %v1169_v16 = vmul.f32 0.7978846, %v1165_v13  ;;  %v1168_v17 = vadd.f32 %v1164_v14, %v1146_v0  ;;  %v1162_v18 = vmul.f32 %v1158_v15, %v1138_v7  ;;  %1708 = vtanh.f32 %v1171_v12 }
 0x203   : > { %v1172_v19 = vmul.f32 0.7978846, %v1168_v17  ;;  %1710 = vtanh.f32 %v1169_v16  ;;  %v1166_v20 = vadd.f32 %v1162_v18, %v1138_v7 }
 0x205   : > { %1712 = vtanh.f32 %v1172_v19  ;;  %v1170_v21 = vmul.f32 0.7978846, %v1166_v20 }
 0x207   : > { %1714 = vtanh.f32 %v1170_v21 }
 0x20e   : > { %v1709_v22 = vpop.eup %1708 }
 0x20f   : > { %v1179_v28 = vadd.f32 1.0, %v1709_v22 }
 0x210   : > { %v1711_v23 = vpop.eup %1710 }
 0x211   : > { %v1177_v26 = vadd.f32 1.0, %v1711_v23  ;;  %v1183_v38 = vmul.f32 %v1179_v28, %v1151_v33 }
 0x212   : > { %v1713_v24 = vpop.eup %1712 }
 0x213   : > { %v1180_v25 = vadd.f32 1.0, %v1713_v24  ;;  %v1181_v35 = vmul.f32 %v1177_v26, %v1149_v30 }
 0x214   : > { %v1715_v27 = vpop.eup %1714 }
 0x215   : > { %v1178_v32 = vadd.f32 1.0, %v1715_v27  ;;  %v1184_v34 = vmul.f32 %v1180_v25, %v1152_v29 }
 0x217   : > { %v1182_v37 = vmul.f32 %v1178_v32, %v1150_v31  ;;  %v1518_v40 = vpack.c.bf16 %v1184_v34, %v1183_v38 }
 0x219   : > { %v1513_v39 = vpack.c.bf16 %v1182_v37, %v1181_v35  ;;  %1523 = vst [vmem:[%s504_s19 + $0x8] sm:$0xff] %v1518_v40  }
 0x21b   : > { %1514 = vst [vmem:[%s504_s19] sm:$0xff] %v1513_v39  }
 0x21c PF: > { %s24_s25 = sadd.s32 1, %s1722_s25  }
 0x21d   : > { %p21_p4 = scmp.ge.s32.totalorder %s24_s25, 4  }
 0x21f   :  { %23 = sbr.rel (!%p21_p4) target bundleno = 1 (0x1), region = 129 }

</bundles_post_ra>
